<compile_context>
chip_gen: v6e
topology: v6e:2x2x1
jax: 0.10.0
libtpu: 0.0.40
codegen_flags: <defaults>
</compile_context>

<pallas_src>
import math

import jax
import jax.numpy as jnp
from jax.experimental import pallas as pl
from jax.experimental.pallas import tpu as pltpu


def _round_up(x, m):
    return (x + m - 1) // m * m


def ir_fc_kernel(x_ref, w_ref, b_ref, o_ref):
    """Fused head: o = ReLU(x) @ W^T + b for one batch tile.

    x_ref: [tb, F]  compute dtype (bf16 by default)
    w_ref: [F, Lp]  compute dtype (Linear.weight.T, zero-padded to lane-dense Lp)
    b_ref: [1, Lp]  f32
    o_ref: [tb, Lp] f32
    """
    x = jnp.maximum(x_ref[...], 0)                          # nn.ReLU(inplace=True)
    acc = jnp.dot(x, w_ref[...],                            # nn.Linear matmul on the MXU
                  preferred_element_type=jnp.float32)       # f32 accumulation
    o_ref[...] = (acc + b_ref[...]).astype(o_ref.dtype)     # + bias (f32)


def ir_encoder_fc(feats, w_t, b, *, compute_dtype=jnp.bfloat16, tb_max=512):
    """pallas_call wrapper.

    feats: [B, F] f32 backbone features
    w_t:   [F, L] f32 (= Linear.weight.T)
    b:     [1, L] f32
    Returns [B, L] f32.
    """
    B, F = feats.shape
    L = w_t.shape[1]

    # Lane-dense output: pad latent dim up to a multiple of 128.
    Lp = _round_up(L, 128)
    # Big batch tile, sublane aligned; cap so large B still gives >=2 parallel grid
    # steps (shards across v7x's two TensorCores).
    tb = min(_round_up(B, 8), tb_max)
    Bp = _round_up(B, tb)
    grid = Bp // tb

    x = feats.astype(compute_dtype)
    if Bp != B:
        x = jnp.pad(x, ((0, Bp - B), (0, 0)))
    w = w_t.astype(compute_dtype)
    bias = b.astype(jnp.float32)
    if Lp != L:
        w = jnp.pad(w, ((0, 0), (0, Lp - L)))
        bias = jnp.pad(bias, ((0, 0), (0, Lp - L)))

    itemsize = jnp.dtype(compute_dtype).itemsize
    cost = pl.CostEstimate(
        flops=2 * Bp * F * Lp,
        transcendentals=0,
        bytes_accessed=itemsize * (Bp * F + F * Lp) + 4 * (Bp * Lp + Lp),
    )

    out = pl.pallas_call(
        ir_fc_kernel,
        out_shape=jax.ShapeDtypeStruct((Bp, Lp), jnp.float32),
        grid_spec=pltpu.PrefetchScalarGridSpec(
            num_scalar_prefetch=0,
            grid=(grid,),
            in_specs=[
                pl.BlockSpec((tb, F), lambda i: (i, 0)),    # batch tile of features
                pl.BlockSpec((F, Lp), lambda i: (0, 0)),    # full (padded) weight, resident
                pl.BlockSpec((1, Lp), lambda i: (0, 0)),    # bias row (f32)
            ],
            out_specs=pl.BlockSpec((tb, Lp), lambda i: (i, 0)),
        ),
        compiler_params=pltpu.CompilerParams(
            dimension_semantics=("parallel",)),
        cost_estimate=cost,
    )(x, w, bias)

    return out[:B, :L]


# TODO(synk): IR_50 backbone (external module + pretrained .pth checkpoint) has no
# in-file definition and cannot be reproduced here; the kernel consumes the [B, 512]
# feature vector that `self.features(x)` would produce.
def ir_encoder_forward(feats, params, *, compute_dtype=jnp.bfloat16):
    # `fine_tune=False` path: the backbone runs under torch.no_grad(); mirror that by
    # stopping gradients on the (pre-extracted) features before the trainable fc head.
    feats = jax.lax.stop_gradient(feats)
    return ir_encoder_fc(feats, params["w_t"], params["b"],
                         compute_dtype=compute_dtype)


if __name__ == "__main__":
    B, FEAT, LATENT = 8, 512, 32   # IR_50 emits 512-d embeddings; latent_dim = 32

    key = jax.random.PRNGKey(0)
    k_x, k_w, k_b = jax.random.split(key, 3)

    # stand-in for the 512-d backbone features
    feats = jax.random.normal(k_x, (B, FEAT), dtype=jnp.float32)

    # deterministic nn.Linear(512, latent_dim)-style init: U(-1/sqrt(in), 1/sqrt(in))
    bound = 1.0 / math.sqrt(FEAT)
    w = jax.random.uniform(k_w, (LATENT, FEAT), minval=-bound, maxval=bound,
                           dtype=jnp.float32)            # PyTorch weight layout [out, in]
    b = jax.random.uniform(k_b, (1, LATENT), minval=-bound, maxval=bound,
                           dtype=jnp.float32)

    params = {"w_t": w.T, "b": b}                          # pre-transpose for the kernel

    out = jax.block_until_ready(ir_encoder_forward(feats, params))

    # pure-JAX reference of the fc head with the same bf16 input quantization and
    # f32 accumulation as the kernel.
    x_q = jnp.maximum(feats, 0.0).astype(jnp.bfloat16).astype(jnp.float32)
    w_q = w.T.astype(jnp.bfloat16).astype(jnp.float32)
    ref = x_q @ w_q + b

    assert out.shape == (B, LATENT), out.shape
    assert jnp.allclose(out, ref, atol=1e-3, rtol=1e-3), \
        float(jnp.max(jnp.abs(out - ref)))

    print("KERNEL_OK")
</pallas_src>

<mosaic_0001>
module attributes {stable_mosaic.version = 11 : i64} {
  func.func @ir_fc_kernel(%arg0: i32, %arg1: memref<8x512xbf16, #tpu.memory_space<vmem>>, %arg2: memref<512x128xbf16, #tpu.memory_space<vmem>>, %arg3: memref<1x128xf32, #tpu.memory_space<vmem>>, %arg4: memref<8x128xf32, #tpu.memory_space<vmem>>) attributes {dimension_semantics = [#tpu.dimension_semantics<parallel>], iteration_bounds = array<i64: 1>, scalar_prefetch = 0 : i64, scratch_operands = 0 : i64, tpu.core_type = #tpu.core_type<tc>, window_params = [{transform_indices = @transform_0, window_bounds = array<i64: 8, 512>}, {pipeline_mode = #tpu.pipeline_mode<synchronous>, transform_indices = @transform_1, window_bounds = array<i64: 512, 128>}, {pipeline_mode = #tpu.pipeline_mode<synchronous>, transform_indices = @transform_2, window_bounds = array<i64: 1, 128>}, {transform_indices = @transform_3, window_bounds = array<i64: 8, 128>}]} {
    %c0 = arith.constant 0 : index
    %c0_0 = arith.constant 0 : index
    %0 = vector.load %arg1[%c0, %c0_0] : memref<8x512xbf16, #tpu.memory_space<vmem>>, vector<8x512xbf16>
    %cst = arith.constant 0.000000e+00 : bf16
    %1 = vector.broadcast %cst : bf16 to vector<8x512xbf16>
    %2 = arith.maximumf %0, %1 : vector<8x512xbf16>
    %c0_1 = arith.constant 0 : index
    %c0_2 = arith.constant 0 : index
    %3 = vector.load %arg2[%c0_1, %c0_2] : memref<512x128xbf16, #tpu.memory_space<vmem>>, vector<512x128xbf16>
    %cst_3 = arith.constant dense<0.000000e+00> : vector<8x128xf32>
    %4 = tpu.matmul %2, %3, %cst_3 {dimension_numbers = #tpu.dot_dimension_numbers<[1], [0], [0], [1], [0, 0, 1, 1], [], []>} : vector<8x512xbf16>, vector<512x128xbf16>, vector<8x128xf32> -> vector<8x128xf32>
    %c0_4 = arith.constant 0 : index
    %c0_5 = arith.constant 0 : index
    %5 = vector.load %arg3[%c0_4, %c0_5] : memref<1x128xf32, #tpu.memory_space<vmem>>, vector<1x128xf32>
    %6 = vector.broadcast %5 : vector<1x128xf32> to vector<8x128xf32>
    %7 = arith.addf %4, %6 : vector<8x128xf32>
    %c0_6 = arith.constant 0 : index
    %c0_7 = arith.constant 0 : index
    %8 = vector.load %arg4[%c0_6, %c0_7] : memref<8x128xf32, #tpu.memory_space<vmem>>, vector<8x128xf32>
    tpu.vector_store %arg4[%c0_6, %c0_7], %7 {strides = array<i32>} : memref<8x128xf32, #tpu.memory_space<vmem>>, vector<8x128xf32>,
    return
  }
  func.func @transform_0(%arg0: i32) -> (i32, i32) {
    %c0_i32 = arith.constant 0 : i32
    %c0_i32_0 = arith.constant 0 : i32
    return %arg0, %c0_i32 : i32, i32
  }
  func.func @transform_1(%arg0: i32) -> (i32, i32) {
    %c0_i32 = arith.constant 0 : i32
    %c0_i32_0 = arith.constant 0 : i32
    %c0_i32_1 = arith.constant 0 : i32
    return %c0_i32, %c0_i32_0 : i32, i32
  }
  func.func @transform_2(%arg0: i32) -> (i32, i32) {
    %c0_i32 = arith.constant 0 : i32
    %c0_i32_0 = arith.constant 0 : i32
    %c0_i32_1 = arith.constant 0 : i32
    return %c0_i32, %c0_i32_0 : i32, i32
  }
  func.func @transform_3(%arg0: i32) -> (i32, i32) {
    %c0_i32 = arith.constant 0 : i32
    %c0_i32_0 = arith.constant 0 : i32
    return %arg0, %c0_i32 : i32, i32
  }
}

</mosaic_0001>

<bundles_post_ra>
// kernel: tpu_custom_call.1
= control target key start
LH: loop header
LB: loop body
LE: loop exit
PB: predicated region body
PF: predicated region fallthrough
CT: control target
= control target key end

     0   :  { %8 = vsyncpa [#allocation3], 0  ;;  %s643_s0 = inlined_call_operand.hbm [shape: bf16[8,512], index: 0, kind: input, shape index: {}]   ;;  %s644_s1 = inlined_call_operand.hbm [shape: bf16[512,128], index: 1, kind: input, shape index: {}]   ;;  %s645_s2 = inlined_call_operand.vmem [shape: f32[1,128], index: 2, kind: input, shape index: {}]   ;;  %s646_s3 = inlined_call_operand.hbm [shape: f32[8,128], index: 3, kind: output, shape index: {}]  }
   0x1   :  { %9 = vsyncpa [#allocation6], 0 }
   0x2   :  { %10 = vsyncpa [#allocation4], 0  ;;  %s605_s12 = smov [#allocation2]   ;;  %s606_s14 = smov [#allocation5]  }
   0x3   :  { %s17_s13 = sshll.u32 %s605_s12, 4  ;;  %s26_s15 = sshll.u32 %s606_s14, 4  ;;  %s18_s13 = int_to_ptr.vmem [resolvable:$true] %s17_s13  ;;  %s27_s15 = int_to_ptr.vmem [resolvable:$true] %s26_s15 }
   0x4   :  { %s547_s16 = scalar_lea.vmem %s18_s13, 256  ;;  %p552_p1 = scmp.lt.s32.totalorder %s18_s13, %s18_s13 }
   0x5   :  { %p548_p0 = scmp.ne.s32.totalorder %s18_s13, %s547_s16  ;;  %p553_p2 = scmp.lt.s32.totalorder %s547_s16, %s547_s16 }
   0x7   :  { %p554_p3 = por %p553_p2, %p552_p1 }
   0x9   :  { %p555_p4 = pnand %p554_p3, %p548_p0 }
   0xb   :  { %558 = shalt.err (!%p555_p4)
}
   0xc   :  { %20 = dma.hbm_to_vmem [thread:$0]  %s643_s0, 256, %s18_s13, [#allocation3]  }
   0xd   :  { %s567_s19 = scalar_lea.vmem %s27_s15, 4096  ;;  %p572_p6 = scmp.lt.s32.totalorder %s27_s15, %s27_s15 }
   0xe   :  { %p568_p5 = scmp.ne.s32.totalorder %s27_s15, %s567_s19  ;;  %p573_p7 = scmp.lt.s32.totalorder %s567_s19, %s567_s19 }
  0x10   :  { %p574_p8 = por %p573_p7, %p572_p6 }
  0x12   :  { %p575_p9 = pnand %p574_p8, %p568_p5 }
  0x14   :  { %578 = shalt.err (!%p575_p9)
}
  0x15   :  { %s607_s20 = smov 64   ;;  %s608_s21 = smov 4  }
  0x16   :  { %32 = dma.hbm_to_vmem [thread:$0]  %s644_s1, 4096, %s27_s15, [#allocation6], %s607_s20, %s607_s20, %s608_s21  }
  0x17   :  { %599 = dma.done.wait [#allocation3], 256  }
  0x18   :  { %600 = vsyncadd [#allocation3], 4294967040 }
  0x19   :  { %601 = dma.done.wait [#allocation6], 4096  }
  0x1a   :  { %602 = vsyncadd [#allocation6], 4294963200  ;;  %v507_v0 = vld [vmem:[#allocation5 + $0x78] sm:$0xff]   ;;  %v511_v4 = vld [vmem:[#allocation5 + $0x70] sm:$0xff]   ;;  %v609_v34 = vmov 0   ;;  %s610_s24 = smov [#allocation7]  }
  0x1b   :  { %v508_v1 = vld [vmem:[#allocation5 + $0xf8] sm:$0xff]   ;;  %457 = vmatprep.subr.bf16.mxu0 %v507_v0  ;;  %v512_v5 = vld [vmem:[#allocation5 + $0xf0] sm:$0xff]   ;;  %v515_v8 = vld [vmem:[#allocation5 + $0x68] sm:$0xff]   ;;  %s410_s25 = sshll.u32 %s610_s24, 4  ;;  %s411_s25 = int_to_ptr.vmem [resolvable:$true] %s410_s25 }
  0x1c   :  { %v509_v2 = vld [vmem:[#allocation5 + $0x38] sm:$0xff]   ;;  %479 = vmatprep.subr.bf16.mxu1 %v508_v1  ;;  %v513_v6 = vld [vmem:[#allocation5 + $0x30] sm:$0xff]   ;;  %v516_v9 = vld [vmem:[#allocation5 + $0xe8] sm:$0xff]   ;;  %s579_s26 = scalar_lea.vmem %s411_s25, 128  ;;  %p584_p11 = scmp.lt.s32.totalorder %s411_s25, %s411_s25 }
  0x1d   :  { %v510_v3 = vld [vmem:[#allocation5 + $0xb8] sm:$0xff]   ;;  %458 = vmatpush3.bf16.msra.mxu0 %v509_v2  ;;  %v514_v7 = vld [vmem:[#allocation5 + $0xb0] sm:$0xff]   ;;  %v517_v10 = vld [vmem:[#allocation5 + $0x28] sm:$0xff]   ;;  %p580_p10 = scmp.ne.s32.totalorder %s411_s25, %s579_s26  ;;  %p585_p12 = scmp.lt.s32.totalorder %s579_s26, %s579_s26 }
  0x1e   :  { %480 = vmatpush3.bf16.msra.mxu1 %v510_v3  ;;  %459 = vmatprep.subr.bf16.mxu0 %v511_v4  ;;  %v518_v11 = vld [vmem:[#allocation5 + $0xa8] sm:$0xff]   ;;  %v519_v12 = vld [vmem:[#allocation5 + $0x60] sm:$0xff]   ;;  %v523_v16 = vld [vmem:[#allocation5 + $0x58] sm:$0xff]  }
  0x1f   :  { %481 = vmatprep.subr.bf16.mxu1 %v512_v5  ;;  %v520_v13 = vld [vmem:[#allocation5 + $0xe0] sm:$0xff]   ;;  %v524_v17 = vld [vmem:[#allocation5 + $0xd8] sm:$0xff]   ;;  %v527_v20 = vld [vmem:[#allocation5 + $0x50] sm:$0xff]   ;;  %p586_p13 = por %p585_p12, %p584_p11 }
  0x20   :  { %v521_v14 = vld [vmem:[#allocation5 + $0x20] sm:$0xff]   ;;  %v525_v18 = vld [vmem:[#allocation5 + $0x18] sm:$0xff]   ;;  %v528_v21 = vld [vmem:[#allocation5 + $0xd0] sm:$0xff]  }
  0x21   :  { %460 = vmatpush3.bf16.msra.mxu0 %v513_v6  ;;  %v522_v15 = vld [vmem:[#allocation5 + $0xa0] sm:$0xff]   ;;  %v526_v19 = vld [vmem:[#allocation5 + $0x98] sm:$0xff]   ;;  %v529_v22 = vld [vmem:[#allocation5 + $0x10] sm:$0xff]   ;;  %p587_p0 = pnand %p586_p13, %p580_p10 }
  0x22   :  { %482 = vmatpush3.bf16.msra.mxu1 %v514_v7  ;;  %461 = vmatprep.subr.bf16.mxu0 %v515_v8  ;;  %v530_v23 = vld [vmem:[#allocation5 + $0x90] sm:$0xff]   ;;  %v531_v24 = vld [vmem:[#allocation5 + $0x48] sm:$0xff]   ;;  %v535_v28 = vld [vmem:[#allocation5 + $0x40] sm:$0xff]  }
  0x23   :  { %483 = vmatprep.subr.bf16.mxu1 %v516_v9  ;;  %v532_v25 = vld [vmem:[#allocation5 + $0xc8] sm:$0xff]   ;;  %v536_v29 = vld [vmem:[#allocation5 + $0xc0] sm:$0xff]   ;;  %v42_v32 = vld [vmem:[#allocation2] sm:$0xff] }
  0x24   :  { %v533_v26 = vld [vmem:[#allocation5 + $0x8] sm:$0xff]   ;;  %v537_v30 = vld [vmem:[#allocation5] sm:$0xff]   ;;  %v43_v33 = vld [vmem:[#allocation2 + $0x8] sm:$0xff]  ;;  %v44_v35 = vmax.bf16 %v609_v34, %v42_v32 }
  0x25   :  { %462 = vmatpush3.bf16.msra.mxu0 %v517_v10  ;;  %v534_v27 = vld [vmem:[#allocation5 + $0x88] sm:$0xff]   ;;  %v538_v31 = vld [vmem:[#allocation5 + $0x80] sm:$0xff]   ;;  %v45_v36 = vmax.bf16 %v609_v34, %v43_v33  ;;  %v420_v43 = vld [vmem:[%s645_s2] ss:$0 sm:$0xff] }
  0x26   :  { %484 = vmatpush3.bf16.msra.mxu1 %v518_v11  ;;  %463 = vmatprep.subr.bf16.mxu0 %v519_v12  ;;  %v422_v37 = vcombine.high %v44_v35, %v44_v35  ;;  %v421_v39 = vcombine.low %v44_v35, %v44_v35 }
  0x27   :  { %485 = vmatprep.subr.bf16.mxu1 %v520_v13  ;;  %v424_v38 = vcombine.high %v45_v36, %v45_v36  ;;  %v423_v40 = vcombine.low %v45_v36, %v45_v36 }
  0x28   :  { %355 = vmatprep.mubr.bf16.mxu0 %v422_v37 }
  0x29   :  { %464 = vmatpush3.bf16.msra.mxu0 %v521_v14  ;;  %395 = vmatprep.mubr.bf16.mxu1 %v424_v38 }
  0x2a   :  { %486 = vmatpush3.bf16.msra.mxu1 %v522_v15  ;;  %465 = vmatprep.subr.bf16.mxu0 %v523_v16 }
  0x2b   :  { %487 = vmatprep.subr.bf16.mxu1 %v524_v17 }
  0x2d   :  { %466 = vmatpush3.bf16.msra.mxu0 %v525_v18 }
  0x2e   :  { %488 = vmatpush3.bf16.msra.mxu1 %v526_v19  ;;  %467 = vmatprep.subr.bf16.mxu0 %v527_v20 }
  0x2f   :  { %489 = vmatprep.subr.bf16.mxu1 %v528_v21 }
  0x31   :  { %468 = vmatpush3.bf16.msra.mxu0 %v529_v22 }
  0x32   :  { %490 = vmatpush3.bf16.msra.mxu1 %v530_v23  ;;  %469 = vmatprep.subr.bf16.mxu0 %v531_v24 }
  0x33   :  { %491 = vmatprep.subr.bf16.mxu1 %v532_v25 }
  0x35   :  { %470 = vmatpush3.bf16.msra.mxu0 %v533_v26 }
  0x36   :  { %492 = vmatpush3.bf16.msra.mxu1 %v534_v27  ;;  %471 = vmatprep.subr.bf16.mxu0 %v535_v28 }
  0x37   :  { %493 = vmatprep.subr.bf16.mxu1 %v536_v29 }
  0x39   :  { %472 = vmatpush3.bf16.msra.mxu0 %v537_v30 }
  0x3a   :  { %494 = vmatpush3.bf16.msra.mxu1 %v538_v31 }
  0x3c   :  { %356 = vmatmul.mubr.bf16.vlgmr.msra.gmra.mxu0 %v421_v39 }
  0x3d   :  { %396 = vmatmul.mubr.bf16.vlgmr.msra.gmra.mxu1 %v423_v40 }
  0xfc   :  { %v473_v41 = vpop.f32.mrf.mxu0 }
  0xfd   :  { %v495_v42 = vpop.f32.mrf.mxu1 }
  0xfe   :  { %v474_v44 = vpop.f32.mrf.mxu0 }
  0xff   :  { %v496_v45 = vpop.f32.mrf.mxu1  ;;  %v475_v46 = vadd.f32 %v474_v44, %v473_v41 }
 0x100   :  { %v476_v47 = vpop.f32.mrf.mxu0  ;;  %v497_v50 = vadd.f32 %v496_v45, %v495_v42 }
 0x101   :  { %v498_v48 = vpop.f32.mrf.mxu1  ;;  %v358_v49 = vadd.f32 %v475_v46, %v420_v43 }
 0x102   :  { %v477_v51 = vpop.f32.mrf.mxu0 }
 0x103   :  { %v499_v52 = vpop.f32.mrf.mxu1  ;;  %v398_v53 = vadd.f32 %v497_v50, %v358_v49 }
 0x105   :  { %403 = vst [vmem:[#allocation7] sm:$0xff] %v398_v53 }
 0x106   :  { %590 = shalt.err (!%p587_p0)
}
 0x107   :  { %413 = dma.vmem_to_hbm [thread:$0]  %s411_s25, 128, %s646_s3, [#allocation4]  }
 0x108   :  { %603 = dma.done.wait [#allocation4], 128  }
 0x109   :  { %604 = vsyncadd [#allocation4], 4294967168 }
 0x10a   :  { %417 = vsyncpa [#allocation3], 1 }
 0x10b   :  { %418 = vsyncpa [#allocation6], 1 }
 0x10c   :  { %419 = vsyncpa [#allocation4], 1 }

</bundles_post_ra>
